<compile_context>
chip_gen: v5e
topology: v5e:2x2
jax: 0.10.0
libtpu: 0.0.40
codegen_flags: <defaults>
</compile_context>

<pallas_src>
import numpy as np
import jax
import jax.numpy as jnp
from jax import lax
from jax.experimental import pallas as pl
from jax.experimental.pallas import tpu as pltpu


# ---------------------------------------------------------------------------
# Host-side helpers.
# ---------------------------------------------------------------------------

def _round_up(x: int, m: int) -> int:
    return ((x + m - 1) // m) * m


def _sublane(itemsize: int) -> int:
    return {4: 8, 2: 16, 1: 32}.get(int(itemsize), 8)


def _padded_tile_bytes(rows: int, cols: int, itemsize: int) -> int:
    """VMEM bytes of a (rows, cols) tile after (sublane, 128) layout padding."""
    return _round_up(rows, _sublane(itemsize)) * _round_up(cols, 128) * itemsize


def _bilinear_matrix_np(n_in: int, n_out: int) -> np.ndarray:
    """1-D bilinear interpolation matrix (n_out, n_in), align_corners=True."""
    if n_in == 1:
        return np.ones((n_out, 1), dtype=np.float32)
    src = np.arange(n_out, dtype=np.float64) * (n_in - 1) / (n_out - 1)
    lo = np.clip(np.floor(src).astype(np.int64), 0, n_in - 2)
    frac = (src - lo).astype(np.float32)
    A = np.zeros((n_out, n_in), dtype=np.float32)
    A[np.arange(n_out), lo] += 1.0 - frac
    A[np.arange(n_out), lo + 1] += frac
    return A


def _padded_interp_matrix_np(n_in, n_out, pad_before, pad_after):
    """Interp matrix with the zero padding folded in as zero rows.
    Shape: (pad_before + n_out + pad_after, n_in)."""
    A = _bilinear_matrix_np(n_in, n_out)
    out = np.zeros((pad_before + n_out + pad_after, n_in), dtype=np.float32)
    out[pad_before:pad_before + n_out, :] = A
    return out


_WORK_BUDGET = 24 << 20   # padded working-set target; leaves headroom on v7x (64 MiB VMEM)


def _pick_batch(nc, per_plane_bytes, out_plane_bytes, const_bytes, mult):
    """Planes per grid step, from the padded-tile VMEM budget.

    Targets ~4 MiB output blocks (HBM roofline) and keeps >=2 grid steps when
    there is enough work so ("parallel",) shards across v7x's two TensorCores.
    """
    budget = max(1 << 20, _WORK_BUDGET - const_bytes)
    b = budget // max(1, per_plane_bytes)
    b = min(b, max(1, (4 << 20) // max(1, out_plane_bytes)))
    if nc >= 16:
        b = min(b, (nc + 1) // 2)
    b = min(b, nc)
    if mult > 1 and b < nc:
        b = max(mult, b - b % mult) if b >= mult else min(mult, nc)
    return max(1, int(b))


# ---------------------------------------------------------------------------
# Kernels.
# ---------------------------------------------------------------------------

def _up_fused_kernel(x_ref, kt_ref, o_ref):
    # x_ref: (B, h*w)   flattened input planes (lane dim = h*w)
    # kt_ref:(h*w, h2*w2) kron(AH_pad, AW_pad)^T — upsample + zero-pad in one matrix
    # o_ref: (B, h2*w2) flattened output planes (lane-dense store)
    x = x_ref[...]
    if x.dtype != kt_ref.dtype:
        x = x.astype(kt_ref.dtype)
    out = jnp.dot(x, kt_ref[...], preferred_element_type=jnp.float32)
    o_ref[...] = out.astype(o_ref.dtype)


def _up_separable_kernel(x_ref, awt_ref, ah_ref, o_ref):
    # x_ref:  (B, H, W)
    # awt_ref:(W, W2)   transposed col interp matrix (pad cols folded in)
    # ah_ref: (H2, H)   row interp matrix (pad rows folded in)
    # o_ref:  (B, H2, W2)
    b, h, w = x_ref.shape
    h2, w2 = o_ref.shape[1], o_ref.shape[2]
    cd = awt_ref.dtype

    x = x_ref[...]
    if x.dtype != cd:
        x = x.astype(cd)

    # Column (W) interpolation + left/right zero pad: one MXU matmul, M = B*H,
    # lane-dense N = W2.
    t = jnp.dot(x.reshape(b * h, w), awt_ref[...],
                preferred_element_type=jnp.float32)            # (B*H, W2) f32
    t = t.reshape(b, h, w2).astype(cd)

    # Row (H) interpolation + top/bottom zero pad.  Batched matmul with
    # lane-dense N = W2 (the broadcast of AH is counted in the VMEM budget; a
    # 2Dx3D non-batched dot_general is not reliably lowered by Mosaic).
    ah = jnp.broadcast_to(ah_ref[...], (b, h2, h))
    out = lax.dot_general(ah, t,
                          dimension_numbers=(((2,), (1,)), ((0,), (0,))),
                          preferred_element_type=jnp.float32)  # (B, H2, W2)
    o_ref[...] = out.astype(o_ref.dtype)


# ---------------------------------------------------------------------------
# Wrapper (= Up(bilinear=True).forward).
# ---------------------------------------------------------------------------

def up_forward(x1: jnp.ndarray, x2: jnp.ndarray) -> jnp.ndarray:
    n, c, h, w = (int(d) for d in x1.shape)
    h2, w2 = int(x2.shape[2]), int(x2.shape[3])
    dy, dx = h2 - 2 * h, w2 - 2 * w
    # TODO(synk): negative diffs (F.pad crop semantics when x2 < 2*x1) not handled;
    # U-Net / TEANet decoder usage always has x2 >= 2*x1.
    assert dy >= 0 and dx >= 0, "expected x2 spatial size >= 2 * x1 spatial size"

    dtype = x1.dtype
    xi = jnp.dtype(dtype).itemsize
    mat_dtype = jnp.bfloat16 if dtype == jnp.bfloat16 else jnp.float32
    mi = jnp.dtype(mat_dtype).itemsize
    nc = n * c
    hw, s2 = h * w, h2 * w2

    ah_np = _padded_interp_matrix_np(h, 2 * h, dy // 2, dy - dy // 2)   # (h2, h)
    aw_np = _padded_interp_matrix_np(w, 2 * w, dx // 2, dx - dx // 2)   # (w2, w)

    # Fused-path viability: K must fit VMEM and the Kronecker FLOP inflation
    # must keep the kernel HBM-bound (not MXU-bound).
    kron_bytes = 2 * _padded_tile_bytes(hw, s2, mi)         # double-buffer-conservative
    arith_int = 2.0 * hw * s2 / max(1, (hw + s2) * xi)      # FLOP per HBM byte per plane
    use_fused = (hw <= 1024 and kron_bytes <= (10 << 20)
                 and arith_int <= (400.0 if mi == 2 else 128.0))

    if use_fused:
        in_pp = _round_up(hw, 128) * xi
        out_pp = _round_up(s2, 128) * xi
        acc_pp = _round_up(s2, 128) * 4                      # f32 matmul result
        cast_pp = _round_up(hw, 128) * mi if mat_dtype != dtype else 0
        per_plane = 2 * (in_pp + out_pp) + acc_pp + cast_pp

        b = _pick_batch(nc, per_plane, out_pp, kron_bytes, mult=8)
        nc_pad = _round_up(nc, b)

        kt = jnp.asarray(np.kron(ah_np, aw_np).T, dtype=mat_dtype)      # (h*w, h2*w2)
        x_flat = x1.reshape(nc, hw)
        if nc_pad != nc:
            x_flat = jnp.pad(x_flat, ((0, nc_pad - nc), (0, 0)))

        est = b * per_plane + kron_bytes + (1 << 20)
        vmem_limit = int(min(max(est + (2 << 20), 16 << 20), 100 << 20))

        out_flat = pl.pallas_call(
            _up_fused_kernel,
            out_shape=jax.ShapeDtypeStruct((nc_pad, s2), dtype),
            grid_spec=pltpu.PrefetchScalarGridSpec(
                num_scalar_prefetch=0,
                grid=(nc_pad // b,),
                in_specs=[
                    pl.BlockSpec((b, hw), lambda i: (i, 0)),
                    pl.BlockSpec((hw, s2), lambda i: (0, 0)),
                ],
                out_specs=pl.BlockSpec((b, s2), lambda i: (i, 0)),
            ),
            compiler_params=pltpu.CompilerParams(
                dimension_semantics=("parallel",),
                vmem_limit_bytes=vmem_limit,
            ),
        )(x_flat, kt)

        if nc_pad != nc:
            out_flat = out_flat[:nc]
        return out_flat.reshape(n, c, h2, w2)

    # ---------------- separable path (larger planes) -------------------------
    ci = mi
    w2p = _round_up(w2, 128)
    in_pp = _round_up(h, _sublane(xi)) * _round_up(w, 128) * xi
    out_pp = _round_up(h2, _sublane(xi)) * w2p * xi
    tmp_pp = _round_up(h, 8) * w2p * 4
    if ci != 4:
        tmp_pp += _round_up(h, _sublane(ci)) * w2p * ci
    ahb_pp = _round_up(h2, _sublane(ci)) * _round_up(h, 128) * ci       # broadcast AH
    acc_pp = _round_up(h2, 8) * w2p * 4
    castx_pp = _round_up(h, _sublane(ci)) * _round_up(w, 128) * ci if ci != xi else 0
    per_plane = 2 * (in_pp + out_pp) + tmp_pp + ahb_pp + acc_pp + castx_pp
    const_b = 2 * (_padded_tile_bytes(w, w2, ci) + _padded_tile_bytes(h2, h, ci))

    b = _pick_batch(nc, per_plane, out_pp, const_b, mult=1)
    nc_pad = _round_up(nc, b)

    ah = jnp.asarray(ah_np, dtype=mat_dtype)        # (h2, h)
    awt = jnp.asarray(aw_np.T, dtype=mat_dtype)     # (w, w2)
    x_flat = x1.reshape(nc, h, w)
    if nc_pad != nc:
        x_flat = jnp.pad(x_flat, ((0, nc_pad - nc), (0, 0), (0, 0)))

    est = b * per_plane + const_b + (1 << 20)
    vmem_limit = int(min(max(est + (2 << 20), 16 << 20), 100 << 20))

    out = pl.pallas_call(
        _up_separable_kernel,
        out_shape=jax.ShapeDtypeStruct((nc_pad, h2, w2), dtype),
        grid_spec=pltpu.PrefetchScalarGridSpec(
            num_scalar_prefetch=0,
            grid=(nc_pad // b,),
            in_specs=[
                pl.BlockSpec((b, h, w), lambda i: (i, 0, 0)),
                pl.BlockSpec((w, w2), lambda i: (0, 0)),
                pl.BlockSpec((h2, h), lambda i: (0, 0)),
            ],
            out_specs=pl.BlockSpec((b, h2, w2), lambda i: (i, 0, 0)),
        ),
        compiler_params=pltpu.CompilerParams(
            dimension_semantics=("parallel",),
            vmem_limit_bytes=vmem_limit,
        ),
    )(x_flat, awt, ah)

    if nc_pad != nc:
        out = out[:nc]
    return out.reshape(n, c, h2, w2)


# ---------------------------------------------------------------------------
# Pure-JAX reference for correctness checks.
# ---------------------------------------------------------------------------

def _up_reference(x1, x2):
    n, c, h, w = x1.shape
    h2, w2 = int(x2.shape[2]), int(x2.shape[3])
    a_h = jnp.asarray(_bilinear_matrix_np(h, 2 * h))
    a_w = jnp.asarray(_bilinear_matrix_np(w, 2 * w))
    up = jnp.einsum("oh,nchw,pw->ncop", a_h, x1.astype(jnp.float32), a_w)
    dyy, dxx = h2 - up.shape[2], w2 - up.shape[3]
    return jnp.pad(up, ((0, 0), (0, 0),
                        (dyy // 2, dyy - dyy // 2),
                        (dxx // 2, dxx - dxx // 2))).astype(jnp.float32)


if __name__ == "__main__":
    key = jax.random.PRNGKey(0)
    k1, k2, k3, k4 = jax.random.split(key, 4)

    # 1) Small decoder stage (fused Kronecker path): 8x8 -> pad to skip 17x18.
    x1 = jax.random.normal(k1, (2, 4, 8, 8), dtype=jnp.float32)
    x2 = jax.random.normal(k2, (2, 4, 17, 18), dtype=jnp.float32)
    out = jax.block_until_ready(up_forward(x1, x2))
    ref = _up_reference(x1, x2)
    np.testing.assert_allclose(np.asarray(out), np.asarray(ref), rtol=1e-5, atol=1e-5)
    assert out.shape == (2, 4, 17, 18)

    # 2) Larger plane (separable path): 40x40 -> pad to 81x82.
    y1 = jax.random.normal(k3, (1, 2, 40, 40), dtype=jnp.float32)
    y2 = jax.random.normal(k4, (1, 2, 81, 82), dtype=jnp.float32)
    out2 = jax.block_until_ready(up_forward(y1, y2))
    ref2 = _up_reference(y1, y2)
    np.testing.assert_allclose(np.asarray(out2), np.asarray(ref2), rtol=1e-5, atol=1e-5)

    # 3) bf16 caller: bf16 HBM traffic + bf16 MXU operands, f32 accumulation.
    out3 = jax.block_until_ready(up_forward(x1.astype(jnp.bfloat16), x2))
    np.testing.assert_allclose(np.asarray(out3, dtype=np.float32), np.asarray(ref),
                               rtol=5e-2, atol=5e-2)

    print("KERNEL_OK")
</pallas_src>

<mosaic_0001>
module attributes {stable_mosaic.version = 11 : i64} {
  func.func @_up_fused_kernel(%arg0: i32, %arg1: memref<8x64xf32, #tpu.memory_space<vmem>>, %arg2: memref<64x306xf32, #tpu.memory_space<vmem>>, %arg3: memref<8x306xf32, #tpu.memory_space<vmem>>) attributes {dimension_semantics = [#tpu.dimension_semantics<parallel>], iteration_bounds = array<i64: 1>, scalar_prefetch = 0 : i64, scratch_operands = 0 : i64, tpu.core_type = #tpu.core_type<tc>, window_params = [{transform_indices = @transform_0, window_bounds = array<i64: 8, 64>}, {pipeline_mode = #tpu.pipeline_mode<synchronous>, transform_indices = @transform_1, window_bounds = array<i64: 64, 306>}, {transform_indices = @transform_2, window_bounds = array<i64: 8, 306>}]} {
    %c0 = arith.constant 0 : index
    %c0_0 = arith.constant 0 : index
    %0 = vector.load %arg1[%c0, %c0_0] : memref<8x64xf32, #tpu.memory_space<vmem>>, vector<8x64xf32>
    %c0_1 = arith.constant 0 : index
    %c0_2 = arith.constant 0 : index
    %1 = vector.load %arg2[%c0_1, %c0_2] : memref<64x306xf32, #tpu.memory_space<vmem>>, vector<64x306xf32>
    %cst = arith.constant dense<0.000000e+00> : vector<8x306xf32>
    %2 = tpu.matmul %0, %1, %cst {dimension_numbers = #tpu.dot_dimension_numbers<[1], [0], [0], [1], [0, 0, 1, 1], [], []>} : vector<8x64xf32>, vector<64x306xf32>, vector<8x306xf32> -> vector<8x306xf32>
    %c0_3 = arith.constant 0 : index
    %c0_4 = arith.constant 0 : index
    %3 = vector.load %arg3[%c0_3, %c0_4] : memref<8x306xf32, #tpu.memory_space<vmem>>, vector<8x306xf32>
    tpu.vector_store %arg3[%c0_3, %c0_4], %2 {strides = array<i32>} : memref<8x306xf32, #tpu.memory_space<vmem>>, vector<8x306xf32>,
    return
  }
  func.func @transform_0(%arg0: i32) -> (i32, i32) {
    %c0_i32 = arith.constant 0 : i32
    %c0_i32_0 = arith.constant 0 : i32
    return %arg0, %c0_i32 : i32, i32
  }
  func.func @transform_1(%arg0: i32) -> (i32, i32) {
    %c0_i32 = arith.constant 0 : i32
    %c0_i32_0 = arith.constant 0 : i32
    %c0_i32_1 = arith.constant 0 : i32
    return %c0_i32, %c0_i32_0 : i32, i32
  }
  func.func @transform_2(%arg0: i32) -> (i32, i32) {
    %c0_i32 = arith.constant 0 : i32
    %c0_i32_0 = arith.constant 0 : i32
    return %arg0, %c0_i32 : i32, i32
  }
}

</mosaic_0001>

<bundles_post_ra>
// kernel: tpu_custom_call.1
= control target key start
LH: loop header
LB: loop body
LE: loop exit
PB: predicated region body
PF: predicated region fallthrough
CT: control target
= control target key end

     0   :  { %7 = vsyncpa [#allocation3], 0  ;;  %s268_s0 = inlined_call_operand.hbm [shape: f32[8,64], index: 0, kind: input, shape index: {}]   ;;  %s269_s1 = inlined_call_operand.hbm [shape: f32[64,306], index: 1, kind: input, shape index: {}]   ;;  %s270_s2 = inlined_call_operand.hbm [shape: f32[8,306], index: 2, kind: output, shape index: {}]  }
   0x1   :  { %8 = vsyncpa [#allocation6], 0 }
   0x2   :  { %9 = vsyncpa [#allocation4], 0  ;;  %s15_s11 = sshll.u32 %s268_s0, 4  ;;  %s239_s12 = smov [#allocation2]   ;;  %s16_s11 = int_to_ptr.hbm [resolvable:$true] %s15_s11 }
   0x3   :  { %s17_s13 = sshll.u32 %s239_s12, 4  ;;  %s25_s16 = sshll.u32 %s269_s1, 4  ;;  %s18_s13 = int_to_ptr.vmem [resolvable:$true] %s17_s13  ;;  %s26_s16 = int_to_ptr.hbm [resolvable:$true] %s25_s16 }
   0x4   :  { %20 = dma.hbm_to_vmem [thread:$0]  %s16_s11, 128, %s18_s13, [#allocation3]  }
   0x5   :  { %s240_s17 = smov [#allocation5]   ;;  %s241_s19 = smov 384  }
   0x6   :  { %s27_s18 = sshll.u32 %s240_s17, 4  ;;  %s242_s20 = smov 24   ;;  %s28_s18 = int_to_ptr.vmem [resolvable:$true] %s27_s18 }
   0x7   :  { %33 = dma.hbm_to_vmem [thread:$0]  %s26_s16, 3072, %s28_s18, [#allocation6], %s241_s19, %s241_s19, %s242_s20  }
   0x8   :  { %233 = dma.done.wait [#allocation3], 128  }
   0x9   :  { %234 = vsyncadd [#allocation3], 4294967168 }
   0xa   :  { %235 = dma.done.wait [#allocation6], 3072  }
   0xb   :  { %236 = vsyncadd [#allocation6], 4294964224  ;;  %v66_v0 = vld [vmem:[#allocation5 + $0xb8] sm:$0xff]  ;;  %v63_v1 = vld [vmem:[#allocation5 + $0xa0] sm:$0xff]  ;;  %vm67_vm0 = vcmask 523264   ;;  %s243_s0 = smov [#allocation7]  }
   0xc   :  { %119 = vmatpush.msra.mxu2 %v66_v0  ;;  %v64_v2 = vld [vmem:[#allocation5 + $0xa8] sm:$0xff]  ;;  %v65_v3 = vld [vmem:[#allocation5 + $0xb0] sm:$0xff]  ;;  %v62_v6 = vld [vmem:[#allocation5 + $0x98] sm:$0xff]  ;;  %s140_s1 = sshll.u32 %s243_s0, 4  ;;  %s142_s23 = sshll.u32 %s270_s2, 4  ;;  %vm133_vm1 = vcmask 408576   ;;  %s141_s1 = int_to_ptr.vmem [resolvable:$true] %s140_s1  ;;  %s143_s23 = int_to_ptr.hbm [resolvable:$true] %s142_s23 }
   0xd   :  { %v60_v4 = vld [vmem:[#allocation5 + $0x88] sm:$0xff]  ;;  %79 = vmatpush.msra.mxu0 %v64_v2  ;;  %99 = vmatpush.msra.mxu1 %v65_v3  ;;  %v61_v5 = vld [vmem:[#allocation5 + $0x90] sm:$0xff]  ;;  %v58_v7 = vld [vmem:[#allocation5 + $0x78] sm:$0xff] }
   0xe   :  { %120 = vmatpush.msra.mxu2 %v63_v1  ;;  %v59_v8 = vld [vmem:[#allocation5 + $0x80] sm:$0xff]  ;;  %v57_v9 = vld [vmem:[#allocation5 + $0x70] sm:$0xff]  ;;  %v56_v11 = vld [vmem:[#allocation5 + $0x68] sm:$0xff] }
   0xf   :  { %80 = vmatpush.msra.mxu0 %v61_v5  ;;  %100 = vmatpush.msra.mxu1 %v62_v6  ;;  %v55_v10 = vld [vmem:[#allocation5 + $0x60] sm:$0xff]  ;;  %v54_v12 = vld [vmem:[#allocation5 + $0x58] sm:$0xff]  ;;  %v52_v13 = vld [vmem:[#allocation5 + $0x48] sm:$0xff] }
  0x10   :  { %121 = vmatpush.msra.mxu2 %v60_v4  ;;  %v53_v14 = vld [vmem:[#allocation5 + $0x50] sm:$0xff]  ;;  %v51_v15 = vld [vmem:[#allocation5 + $0x40] sm:$0xff]  ;;  %v50_v17 = vld [vmem:[#allocation5 + $0x38] sm:$0xff] }
  0x11   :  { %81 = vmatpush.msra.mxu0 %v58_v7  ;;  %101 = vmatpush.msra.mxu1 %v59_v8  ;;  %v49_v16 = vld [vmem:[#allocation5 + $0x30] sm:$0xff]  ;;  %v48_v18 = vld [vmem:[#allocation5 + $0x28] sm:$0xff]  ;;  %v46_v19 = vld [vmem:[#allocation5 + $0x18] sm:$0xff] }
  0x12   :  { %122 = vmatpush.msra.mxu2 %v57_v9  ;;  %v47_v20 = vld [vmem:[#allocation5 + $0x20] sm:$0xff]  ;;  %v45_v21 = vld [vmem:[#allocation5 + $0x10] sm:$0xff]  ;;  %v42_v22 = vld [vmem:[#allocation2] sm:$0xff] }
  0x13   :  { %82 = vmatpush.msra.mxu0 %v55_v10  ;;  %102 = vmatpush.msra.mxu1 %v56_v11  ;;  %v43_v23 = vld [vmem:[#allocation5] sm:$0xff]  ;;  %v44_v24 = vld [vmem:[#allocation5 + $0x8] sm:$0xff] }
  0x14   :  { %123 = vmatpush.msra.mxu2 %v54_v12 }
  0x15   :  { %83 = vmatpush.msra.mxu0 %v52_v13  ;;  %103 = vmatpush.msra.mxu1 %v53_v14 }
  0x16   :  { %124 = vmatpush.msra.mxu2 %v51_v15 }
  0x17   :  { %84 = vmatpush.msra.mxu0 %v49_v16  ;;  %104 = vmatpush.msra.mxu1 %v50_v17 }
  0x18   :  { %125 = vmatpush.msra.mxu2 %v48_v18 }
  0x19   :  { %85 = vmatpush.msra.mxu0 %v46_v19  ;;  %105 = vmatpush.msra.mxu1 %v47_v20 }
  0x1a   :  { %126 = vmatpush.msra.mxu2 %v45_v21 }
  0x1b   :  { %155 = vmatmul.msk.f32.vlgmr.msra.gmra.mxu2 %vm67_vm0, %v42_v22  ;;  %86 = vmatpush.msra.mxu0 %v43_v23 }
  0x1c   :  { %106 = vmatpush.msra.mxu1 %v44_v24  ;;  %153 = vmatmul.msk.f32.vlgmr.msra.gmra.mxu0 %vm67_vm0, %v42_v22 }
  0x1d   :  { %154 = vmatmul.msk.f32.vlgmr.msra.gmra.mxu1 %vm67_vm0, %v42_v22 }
  0x99   :  { %v88_v25 = vpop.f32.mrf.mxu0 }
  0x9a   :  { %131 = vst [vmem:[#allocation7] sm:$0xff] %v88_v25  ;;  %v108_v26 = vpop.f32.mrf.mxu1 }
  0x9b   :  { %132 = vst [vmem:[#allocation7 + $0x8] sm:$0xff] %v108_v26 }
  0x9e   :  { %v128_v27 = vpop.f32.mrf.mxu2 }
  0x9f   :  { %134 = vst.msk [vmem:[#allocation7 + $0x10] sm:$0xff] %vm133_vm1, %v128_v27 }
  0xa0   :  { %145 = dma.vmem_to_hbm [thread:$0]  %s141_s1, 384, %s143_s23, [#allocation4]  }
  0xa1   :  { %237 = dma.done.wait [#allocation4], 384  }
  0xa2   :  { %238 = vsyncadd [#allocation4], 4294966912 }
  0xa3   :  { %150 = vsyncpa [#allocation3], 1 }
  0xa4   :  { %151 = vsyncpa [#allocation6], 1 }
  0xa5   :  { %152 = vsyncpa [#allocation4], 1 }

</bundles_post_ra>
